<compile_context>
chip_gen: v7x
topology: tpu7x:2x2x1
jax: 0.10.0
libtpu: 0.0.40
codegen_flags: <defaults>
</compile_context>

<pallas_src>
import functools

import jax
import jax.numpy as jnp
from jax.experimental import pallas as pl
from jax.experimental.pallas import tpu as pltpu


def _cca_kernel(x_ref, w1t_ref, b1_ref, w2_ref, b2_ref, o_ref, *, inv_hw):
    # Fused single-pass stats over the spatial (lane) axis: sum(x), sum(x*x).
    x = x_ref[...]                                            # (TB, C, HW) f32
    s1 = jnp.sum(x, axis=-1, keepdims=True)                   # (TB, C, 1)
    s2 = jnp.sum(x * x, axis=-1, keepdims=True)               # (TB, C, 1)
    # x's live range ends here; the tile is re-read from the ref for the final
    # store so the compiler does not have to keep a multi-MiB value alive.

    mean = s1 * inv_hw                                        # AdaptiveAvgPool2d(1)
    var = jnp.maximum(s2 * inv_hw - mean * mean, 0.0)         # clamp fp cancellation
    y = jnp.sqrt(var) + mean                                  # contrast (std) + mean

    # conv_du[0]: 1x1 conv C -> C//r == contraction over the channel sublanes.
    # (Tiny at C<=64; for much larger C switch to an MXU dot on a lane-squeezed y.)
    y1 = jnp.sum(w1t_ref[...][None, :, :] * y, axis=1, keepdims=True) + b1_ref[...]
    y1 = jnp.where(y1 >= 0.0, y1, 0.05 * y1)                  # LeakyReLU(0.05)

    # conv_du[2]: 1x1 conv C//r -> C == contraction over the Cr lanes.
    y2 = jnp.sum(w2_ref[...][None, :, :] * y1, axis=-1, keepdims=True) + b2_ref[...]
    gate = jax.nn.sigmoid(y2)                                 # (TB, C, 1)

    # Channel attention: broadcast gate over the spatial lanes (fresh tile read).
    o_ref[...] = x_ref[...] * gate


def _vmem_capacity_bytes():
    try:
        return int(pltpu.get_tpu_info().vmem_capacity_bytes)
    except Exception:
        return 64 << 20   # conservative default: v7x per-TensorCore VMEM


def _pick_tb(batch, bytes_per_batch, max_block_bytes, min_block_bytes=2 << 20):
    """Batch tile: biggest block within budget, preferring >=4 grid steps
    (2 per v7x TensorCore) while keeping blocks >= ~2 MiB for DMA efficiency."""
    fitting = [d for d in range(1, batch + 1)
               if batch % d == 0 and d * bytes_per_batch <= max_block_bytes]
    if not fitting:
        # A single batch slab exceeds the budget; run with TB=1 anyway.
        # TODO(synk): two-pass HW-chunked structure for this case (see header).
        return 1
    # Prefer >= 4 grid steps with reasonably sized blocks.
    for d in sorted(fitting, reverse=True):
        if batch // d >= 4 and d * bytes_per_batch >= min_block_bytes:
            return d
    # Otherwise at least 2 steps so both TensorCores / the pipeline get work.
    for d in sorted(fitting, reverse=True):
        if batch // d >= 2:
            return d
    return max(fitting)


def cca_layer(x, w1, b1, w2, b2):
    """x: (B, C, H, W) f32.  w1: (Cr, C), b1: (Cr,), w2: (C, Cr), b2: (C,)."""
    B, C, H, W = x.shape
    Cr = w1.shape[0]
    HW = H * W

    x2 = x.reshape(B, C, HW)

    # Only pad very small, unaligned HW; for large HW masked partial stores are
    # far cheaper than the extra HBM passes a pad + crop would cost.
    pad_to = HW
    if HW % 128 != 0 and HW < 512:
        pad_to = ((HW + 127) // 128) * 128
        x2 = jnp.pad(x2, ((0, 0), (0, 0), (0, pad_to - HW)))  # zeros keep sums exact

    w1t = w1.T.reshape(C, Cr)        # transposed: contract over channel sublanes
    b1r = b1.reshape(1, Cr)
    w2r = w2.reshape(C, Cr)
    b2r = b2.reshape(C, 1)

    # Generation-aware VMEM budget (v7x: 64 MiB/TC; v5e/v6e: 128 MiB).
    vmem_cap = _vmem_capacity_bytes()
    max_block_bytes = min(12 << 20, max(1 << 20, (vmem_cap - (8 << 20)) // 4))

    bytes_per_batch = C * pad_to * 4
    TB = _pick_tb(B, bytes_per_batch, max_block_bytes)
    block_bytes = TB * bytes_per_batch

    # in + out blocks, double-buffered, plus slack for the tiny weights;
    # never request more than physical VMEM (v5e default scoped limit is 16 MiB,
    # so the explicit override is mandatory there).
    vmem_limit = max(16 << 20, 4 * block_bytes + (2 << 20))
    vmem_limit = min(vmem_limit, vmem_cap - (4 << 20))

    kernel = functools.partial(_cca_kernel, inv_hw=1.0 / float(HW))

    out = pl.pallas_call(
        kernel,
        out_shape=jax.ShapeDtypeStruct((B, C, pad_to), x.dtype),
        grid_spec=pltpu.PrefetchScalarGridSpec(
            num_scalar_prefetch=0,
            grid=(B // TB,),
            in_specs=[
                pl.BlockSpec((TB, C, pad_to), lambda b: (b, 0, 0)),
                pl.BlockSpec((C, Cr), lambda b: (0, 0)),
                pl.BlockSpec((1, Cr), lambda b: (0, 0)),
                pl.BlockSpec((C, Cr), lambda b: (0, 0)),
                pl.BlockSpec((C, 1), lambda b: (0, 0)),
            ],
            out_specs=pl.BlockSpec((TB, C, pad_to), lambda b: (b, 0, 0)),
        ),
        compiler_params=pltpu.CompilerParams(
            dimension_semantics=("parallel",),
            vmem_limit_bytes=int(vmem_limit),
        ),
    )(x2, w1t, b1r, w2r, b2r)

    if pad_to != HW:
        out = out[:, :, :HW]
    return out.reshape(B, C, H, W)


def _reference(x, w1, b1, w2, b2):
    # pure-JAX reference mirroring the PyTorch forward (two-pass variance)
    hw = x.shape[2] * x.shape[3]
    mean = jnp.sum(x, axis=(2, 3), keepdims=True) / hw
    var = jnp.sum((x - mean) ** 2, axis=(2, 3), keepdims=True) / hw
    y = jnp.sqrt(var) + mean                                  # (B, C, 1, 1)
    yv = y[:, :, 0, 0]                                        # (B, C)
    y1 = yv @ w1.T + b1                                       # (B, Cr)
    y1 = jnp.where(y1 >= 0.0, y1, 0.05 * y1)
    y2 = jax.nn.sigmoid(y1 @ w2.T + b2)                       # (B, C)
    return x * y2[:, :, None, None]


if __name__ == "__main__":
    B, C, H, W = 2, 32, 16, 16
    reduction = 8
    Cr = C // reduction

    key = jax.random.PRNGKey(0)
    kx, k1, k2, k3, k4 = jax.random.split(key, 5)

    x = jax.random.normal(kx, (B, C, H, W), dtype=jnp.float32)
    # 1x1 convs == dense layers over the channel dim
    w1 = 0.1 * jax.random.normal(k1, (Cr, C), dtype=jnp.float32)
    b1 = 0.1 * jax.random.normal(k2, (Cr,), dtype=jnp.float32)
    w2 = 0.1 * jax.random.normal(k3, (C, Cr), dtype=jnp.float32)
    b2 = 0.1 * jax.random.normal(k4, (C,), dtype=jnp.float32)

    out = jax.block_until_ready(cca_layer(x, w1, b1, w2, b2))

    ref = _reference(x, w1, b1, w2, b2)
    assert jnp.allclose(out, ref, atol=3e-5, rtol=3e-5), "mismatch vs reference"

    print("KERNEL_OK")
</pallas_src>

<mosaic_0001>
module attributes {stable_mosaic.version = 11 : i64} {
  func.func @_cca_kernel(%arg0: i32, %arg1: memref<1x32x256xf32, #tpu.memory_space<vmem>>, %arg2: memref<32x4xf32, #tpu.memory_space<vmem>>, %arg3: memref<1x4xf32, #tpu.memory_space<vmem>>, %arg4: memref<32x4xf32, #tpu.memory_space<vmem>>, %arg5: memref<32x1xf32, #tpu.memory_space<vmem>>, %arg6: memref<1x32x256xf32, #tpu.memory_space<vmem>>) attributes {dimension_semantics = [#tpu.dimension_semantics<parallel>], iteration_bounds = array<i64: 2>, scalar_prefetch = 0 : i64, scratch_operands = 0 : i64, tpu.core_type = #tpu.core_type<tc>, window_params = [{transform_indices = @transform_0, window_bounds = array<i64: 1, 32, 256>}, {pipeline_mode = #tpu.pipeline_mode<synchronous>, transform_indices = @transform_1, window_bounds = array<i64: 32, 4>}, {pipeline_mode = #tpu.pipeline_mode<synchronous>, transform_indices = @transform_2, window_bounds = array<i64: 1, 4>}, {pipeline_mode = #tpu.pipeline_mode<synchronous>, transform_indices = @transform_3, window_bounds = array<i64: 32, 4>}, {pipeline_mode = #tpu.pipeline_mode<synchronous>, transform_indices = @transform_4, window_bounds = array<i64: 32, 1>}, {transform_indices = @transform_5, window_bounds = array<i64: 1, 32, 256>}]} {
    %c0 = arith.constant 0 : index
    %c0_0 = arith.constant 0 : index
    %c0_1 = arith.constant 0 : index
    %0 = vector.load %arg1[%c0, %c0_0, %c0_1] : memref<1x32x256xf32, #tpu.memory_space<vmem>>, vector<1x32x256xf32>
    %cst = arith.constant dense<0.000000e+00> : vector<1x32xf32>
    %1 = vector.multi_reduction <add>, %0, %cst [2] : vector<1x32x256xf32> to vector<1x32xf32>
    %2 = vector.shape_cast %1 : vector<1x32xf32> to vector<1x32x1xf32>
    %3 = arith.mulf %0, %0 : vector<1x32x256xf32>
    %cst_2 = arith.constant dense<0.000000e+00> : vector<1x32xf32>
    %4 = vector.multi_reduction <add>, %3, %cst_2 [2] : vector<1x32x256xf32> to vector<1x32xf32>
    %5 = vector.shape_cast %4 : vector<1x32xf32> to vector<1x32x1xf32>
    %cst_3 = arith.constant 3.906250e-03 : f32
    %6 = vector.broadcast %cst_3 : f32 to vector<1x32x1xf32>
    %7 = arith.mulf %2, %6 : vector<1x32x1xf32>
    %cst_4 = arith.constant 3.906250e-03 : f32
    %8 = vector.broadcast %cst_4 : f32 to vector<1x32x1xf32>
    %9 = arith.mulf %5, %8 : vector<1x32x1xf32>
    %10 = arith.mulf %7, %7 : vector<1x32x1xf32>
    %11 = arith.subf %9, %10 : vector<1x32x1xf32>
    %cst_5 = arith.constant 0.000000e+00 : f32
    %12 = vector.broadcast %cst_5 : f32 to vector<1x32x1xf32>
    %13 = arith.maximumf %11, %12 : vector<1x32x1xf32>
    %14 = math.sqrt %13 : vector<1x32x1xf32>
    %15 = arith.addf %14, %7 : vector<1x32x1xf32>
    %c0_6 = arith.constant 0 : index
    %c0_7 = arith.constant 0 : index
    %16 = vector.load %arg2[%c0_6, %c0_7] : memref<32x4xf32, #tpu.memory_space<vmem>>, vector<32x4xf32>
    %17 = vector.shape_cast %16 : vector<32x4xf32> to vector<1x32x4xf32>
    %18 = vector.broadcast %15 : vector<1x32x1xf32> to vector<1x32x4xf32>
    %19 = arith.mulf %17, %18 : vector<1x32x4xf32>
    %cst_8 = arith.constant dense<0.000000e+00> : vector<1x4xf32>
    %20 = vector.multi_reduction <add>, %19, %cst_8 [1] : vector<1x32x4xf32> to vector<1x4xf32>
    %21 = vector.shape_cast %20 : vector<1x4xf32> to vector<1x1x4xf32>
    %c0_9 = arith.constant 0 : index
    %c0_10 = arith.constant 0 : index
    %22 = vector.load %arg3[%c0_9, %c0_10] : memref<1x4xf32, #tpu.memory_space<vmem>>, vector<1x4xf32>
    %23 = vector.shape_cast %22 : vector<1x4xf32> to vector<1x1x4xf32>
    %24 = arith.addf %21, %23 : vector<1x1x4xf32>
    %cst_11 = arith.constant 0.000000e+00 : f32
    %25 = vector.broadcast %cst_11 : f32 to vector<1x1x4xf32>
    %26 = arith.cmpf oge, %24, %25 : vector<1x1x4xf32>
    %cst_12 = arith.constant 5.000000e-02 : f32
    %27 = vector.broadcast %cst_12 : f32 to vector<1x1x4xf32>
    %28 = arith.mulf %27, %24 : vector<1x1x4xf32>
    %29 = arith.select %26, %24, %28 : vector<1x1x4xi1>, vector<1x1x4xf32>
    %c0_13 = arith.constant 0 : index
    %c0_14 = arith.constant 0 : index
    %30 = vector.load %arg4[%c0_13, %c0_14] : memref<32x4xf32, #tpu.memory_space<vmem>>, vector<32x4xf32>
    %31 = vector.shape_cast %30 : vector<32x4xf32> to vector<1x32x4xf32>
    %32 = vector.broadcast %29 : vector<1x1x4xf32> to vector<1x32x4xf32>
    %33 = arith.mulf %31, %32 : vector<1x32x4xf32>
    %cst_15 = arith.constant dense<0.000000e+00> : vector<1x32xf32>
    %34 = vector.multi_reduction <add>, %33, %cst_15 [2] : vector<1x32x4xf32> to vector<1x32xf32>
    %35 = vector.shape_cast %34 : vector<1x32xf32> to vector<1x32x1xf32>
    %c0_16 = arith.constant 0 : index
    %c0_17 = arith.constant 0 : index
    %36 = vector.load %arg5[%c0_16, %c0_17] : memref<32x1xf32, #tpu.memory_space<vmem>>, vector<32x1xf32>
    %37 = vector.shape_cast %36 : vector<32x1xf32> to vector<1x32x1xf32>
    %38 = arith.addf %35, %37 : vector<1x32x1xf32>
    %39 = arith.negf %38 : vector<1x32x1xf32>
    %40 = math.exp %39 : vector<1x32x1xf32>
    %cst_18 = arith.constant 1.000000e+00 : f32
    %41 = vector.broadcast %cst_18 : f32 to vector<1x32x1xf32>
    %42 = arith.addf %41, %40 : vector<1x32x1xf32>
    %43 = arith.divf %41, %42 : vector<1x32x1xf32>
    %c0_19 = arith.constant 0 : index
    %c0_20 = arith.constant 0 : index
    %c0_21 = arith.constant 0 : index
    %44 = vector.load %arg1[%c0_19, %c0_20, %c0_21] : memref<1x32x256xf32, #tpu.memory_space<vmem>>, vector<1x32x256xf32>
    %45 = vector.broadcast %43 : vector<1x32x1xf32> to vector<1x32x256xf32>
    %46 = arith.mulf %44, %45 : vector<1x32x256xf32>
    %c0_22 = arith.constant 0 : index
    %c0_23 = arith.constant 0 : index
    %c0_24 = arith.constant 0 : index
    %47 = vector.load %arg6[%c0_22, %c0_23, %c0_24] : memref<1x32x256xf32, #tpu.memory_space<vmem>>, vector<1x32x256xf32>
    tpu.vector_store %arg6[%c0_22, %c0_23, %c0_24], %46 {strides = array<i32>} : memref<1x32x256xf32, #tpu.memory_space<vmem>>, vector<1x32x256xf32>,
    return
  }
  func.func @transform_0(%arg0: i32) -> (i32, i32, i32) {
    %c0_i32 = arith.constant 0 : i32
    %c0_i32_0 = arith.constant 0 : i32
    %c0_i32_1 = arith.constant 0 : i32
    return %arg0, %c0_i32, %c0_i32_0 : i32, i32, i32
  }
  func.func @transform_1(%arg0: i32) -> (i32, i32) {
    %c0_i32 = arith.constant 0 : i32
    %c0_i32_0 = arith.constant 0 : i32
    %c0_i32_1 = arith.constant 0 : i32
    return %c0_i32, %c0_i32_0 : i32, i32
  }
  func.func @transform_2(%arg0: i32) -> (i32, i32) {
    %c0_i32 = arith.constant 0 : i32
    %c0_i32_0 = arith.constant 0 : i32
    %c0_i32_1 = arith.constant 0 : i32
    return %c0_i32, %c0_i32_0 : i32, i32
  }
  func.func @transform_3(%arg0: i32) -> (i32, i32) {
    %c0_i32 = arith.constant 0 : i32
    %c0_i32_0 = arith.constant 0 : i32
    %c0_i32_1 = arith.constant 0 : i32
    return %c0_i32, %c0_i32_0 : i32, i32
  }
  func.func @transform_4(%arg0: i32) -> (i32, i32) {
    %c0_i32 = arith.constant 0 : i32
    %c0_i32_0 = arith.constant 0 : i32
    %c0_i32_1 = arith.constant 0 : i32
    return %c0_i32, %c0_i32_0 : i32, i32
  }
  func.func @transform_5(%arg0: i32) -> (i32, i32, i32) {
    %c0_i32 = arith.constant 0 : i32
    %c0_i32_0 = arith.constant 0 : i32
    %c0_i32_1 = arith.constant 0 : i32
    return %arg0, %c0_i32, %c0_i32_0 : i32, i32, i32
  }
}

</mosaic_0001>

<bundles_post_ra>
// kernel: tpu_custom_call.1
= control target key start
LH: loop header
LB: loop body
LE: loop exit
PB: predicated region body
PF: predicated region fallthrough
CT: control target
= control target key end

     0   :  { %10 = vsyncpa [#allocation3], 0  ;;  %s1034_s0 = inlined_call_operand.hbm [shape: f32[2,32,256], index: 0, kind: input, shape index: {}]   ;;  %s1035_s1 = inlined_call_operand.vmem [shape: f32[32,4], index: 1, kind: input, shape index: {}]   ;;  %s1036_s2 = inlined_call_operand.vmem [shape: f32[1,4], index: 2, kind: input, shape index: {}]   ;;  %s1037_s3 = inlined_call_operand.vmem [shape: f32[32,4], index: 3, kind: input, shape index: {}]   ;;  %s1038_s4 = inlined_call_operand.vmem [shape: f32[32,1], index: 4, kind: input, shape index: {}]   ;;  %s1039_s5 = inlined_call_operand.hbm [shape: f32[2,32,256], index: 5, kind: output, shape index: {}]  }
   0x1   :  { %12 = vsyncpa [#allocation3 + $0x1], 0 }
   0x2   :  { %13 = vsyncpa [#allocation4], 0 }
   0x3   :  { %15 = vsyncpa [#allocation4 + $0x1], 0  ;;  %s773_s18 = smov 0   ;;  %s775_s19 = smov 0  }
   0x4   :  { %s777_s20 = smov 0   ;;  %s779_s21 = smov 0  }
   0x5 LB: > { %s794_s22 = sadd.s32 4294967295, %s734_s21   ;;  %s541_s23 = sadd.s32 4294967294, %s734_s21   ;;  %s734_s21 = sphi %s779_s21, %s1052_s21   ;;  %s730_s20 = sphi %s777_s20, %s1051_s20   ;;  %s726_s19 = sphi %s775_s19, %s1050_s19   ;;  %s722_s18 = sphi %s773_s18, %s1049_s18  }
   0x6   : > { %s798_s24 = sadd.s32 1, %s734_s21   ;;  %s28_s25 = sadd.s32 1, %s730_s20 }
   0x7   : > { %s25_s26 = ssub.s32 %s734_s21, %s798_s24  ;;  %p35_p0 = scmp.ne.s32.totalorder %s730_s20, %s726_s19 }
   0x8   : > { %p26_p1 = scmp.eq.s32.totalorder %s25_s26, 0  ;;  %p36_p2 = scmp.eq.s32.totalorder %s734_s21, 0 }
   0x9   : > { %p41_p3 = scmp.ne.s32.totalorder %s726_s19, %s722_s18  ;;  %p42_p4 = scmp.eq.s32.totalorder %s794_s22, 0 }
   0xa   : > { %s810_s27 = scalar_select %p26_p1, %s730_s20, %s28_s25  }
   0xb   : > { %p812_p5 = por %p36_p2, %p35_p0  ;;  %p816_p6 = por %p42_p4, %p41_p3 }
   0xc   : > { %p149_p7 = scmp.eq.s32.totalorder %s794_s22, 1  ;;  %p155_p8 = scmp.eq.s32.totalorder %s541_s23, 1 }
   0xd   : > { %p573_p10 = scmp.lt.s32.totalorder %s734_s21, 2  ;;  %s187_s7 = sand.u32 1, %s730_s20  }
   0xe   : > { %p823_p11 = por %p149_p7, %p35_p0  ;;  %p827_p12 = por %p155_p8, %p41_p3 }
   0xf   : > { %s559_s8 = sshll.u32 %s734_s21, 10  ;;  %s544_s9 = sshll.u32 %s187_s7, 6 }
  0x10   : > { %s1043_s30 = scalar_select %p823_p11, 1, 0 }
  0x11   : > { %s1044_s6 = scalar_select %p827_p12, 1, 0 }
  0x12   : > { %s836_s12 = scalar_lea.hbm %s1034_s0, %s559_s8  ;;  %s191_s13 = scalar_lea.vmem [#allocation2], %s544_s9 }
  0x13   : > { %s198_s14 = sshll.u32 %s191_s13, 4  ;;  %p840_p13 = pnand %p573_p10, %p812_p5  ;;  %s844_s14 = int_to_ptr.vmem [resolvable:$true] %s198_s14 }
  0x14   : > { %s846_s16 = scalar_lea.sflag [#allocation3], %s187_s7  ;;  %s638_s17 = scalar_lea.hbm %s836_s12, 1024 }
  0x15   : > { %p639_p0 = scmp.ne.s32.totalorder %s836_s12, %s638_s17  ;;  %p640_p1 = pneg %p840_p13 }
  0x16   : > { %s643_s26 = scalar_lea.hbm %s1034_s0, 2048  ;;  %p644_p4 = scmp.lt.u32.totalorder %s836_s12, %s1034_s0 }
  0x17   : > { %p641_p2 = pnand %p640_p1, %p639_p0  ;;  %p645_p5 = scmp.lt.u32.totalorder %s643_s26, %s638_s17 }
  0x18   : > { %p647_p8 = scmp.lt.u32.totalorder %s638_s17, %s836_s12 }
  0x19   : > { %p642_p3 = pneg %p641_p2  ;;  %p646_p7 = por %p645_p5, %p644_p4 }
  0x1b   : > { %p648_p10 = por %p647_p8, %p646_p7 }
  0x1d   : > { %p649_p9 = pnand %p648_p10, %p642_p3 }
  0x1f   : > { %652 = shalt.err (!%p649_p9)
}
  0x20   : > { %s653_s7 = scalar_lea.vmem %s844_s14, 1024  ;;  %s736_s9 = smov [#allocation2]  }
  0x21   : > { %p654_p0 = scmp.ne.s32.totalorder %s844_s14, %s653_s7  ;;  %s658_s10 = sshll.u32 %s736_s9, 4  ;;  %s659_s10 = int_to_ptr.vmem [resolvable:$false] %s658_s10 }
  0x22   : > { %s660_s11 = scalar_lea.vmem %s659_s10, 2048  ;;  %p661_p11 = scmp.lt.s32.totalorder %s844_s14, %s659_s10 }
  0x23   : > { %p656_p2 = pnand %p654_p0, %p640_p1  ;;  %p662_p4 = scmp.lt.s32.totalorder %s660_s11, %s653_s7 }
  0x25   : > { %p657_p12 = pneg %p656_p2  ;;  %p663_p5 = por %p662_p4, %p661_p11 }
  0x27   : > { %p664_p7 = pnand %p663_p5, %p657_p12 }
  0x29   : > { %667 = shalt.err (!%p664_p7)
}
  0x2a   : > { %s737_s13 = smov 256   ;;  %s738_s17 = smov 16  }
  0x2b   : > { %568 = dma.hbm_to_vmem [thread:$0]  (!%p840_p13), %s836_s12, 1024, %s844_s14, %s846_s16, %s737_s13, %s737_s13, %s738_s17  }
  0x2c   : > { %p547_p9 = scmp.ge.s32.totalorder %s734_s21, 1  ;;  %p206_p1 = scmp.lt.s32.totalorder %s734_s21, 3 }
  0x2e   : > { %p207_p3 = pnand %p547_p9, %p206_p1 }
  0x2f   : > { %s877_s23 = sand.u32 (!%p207_p3), 1, %s726_s19  }
  0x30   : > { %210 = sbr.rel (%p207_p3) target bundleno = 590 (0x24e), region = 40  ;;  %s548_s25 = sshll.u32 (!%p207_p3), %s877_s23, 6 }
  0x31   : > { %s213_s26 = scalar_lea.sflag (!%p207_p3), [#allocation3], %s877_s23  ;;  %s216_s28 = scalar_lea.vmem (!%p207_p3), [#allocation2], %s548_s25 }
  0x37   : > { %713 = dma.done.wait (%p816_p6), %s213_s26, 1024  }
  0x38   : > { %715 = vsyncadd (%p816_p6), %s213_s26, 4294966272  ;;  %v887_v0 = vld [vmem:[%s216_s28 + $0x20] sm:$0xff]  ;;  %v889_v1 = vld [vmem:[%s216_s28 + $0x28] sm:$0xff]  ;;  %vm343_vm5 = vcmask 31744   ;;  %s242_s26 = scalar_lea.vmem [#allocation5], %s548_s25  ;;  %s560_s29 = sshll.u32 %s794_s22, 10 }
  0x39   : > { %v891_v2 = vld [vmem:[%s216_s28] sm:$0xff]  ;;  %v257_v3 = vadd.f32 %v889_v1, %v887_v0  ;;  %v895_v4 = vld [vmem:[%s216_s28 + $0x8] sm:$0xff]  ;;  %v897_v5 = vld [vmem:[%s216_s28 + $0x30] sm:$0xff]  ;;  %v267_v20 = vmul.f32 %v887_v0, %v887_v0  ;;  %v268_v21 = vmul.f32 %v889_v1, %v889_v1  ;;  %s988_s14 = scalar_lea.hbm %s1039_s5, %s560_s29  ;;  %s455_s22 = scalar_lea.sflag [#allocation4], %s877_s23 }
  0x3a   : > { %v899_v6 = vld [vmem:[%s216_s28 + $0x38] sm:$0xff]  ;;  %v251_v7 = vadd.f32 %v895_v4, %v891_v2  ;;  %v903_v8 = vld [vmem:[%s216_s28 + $0x10] sm:$0xff]  ;;  %v263_v11 = vmul.f32 %v891_v2, %v891_v2  ;;  %v264_v12 = vmul.f32 %v895_v4, %v895_v4  ;;  %v269_v17 = vmul.f32 %v897_v5, %v897_v5  ;;  %v335_v61 = vld [vmem:[%s1035_s1] sm:$0xff]  ;;  %p1046_p11 = scmp.ne.s32.totalorder %s1043_s30, 0  ;;  %s740_s16 = smov [#allocation5]  }
  0x3b   : > { %v905_v9 = vld [vmem:[%s216_s28 + $0x18] sm:$0xff]  ;;  %258 = vadd.xlane.f32.xlu1 %v257_v3  ;;  %v260_v10 = vadd.f32 %v899_v6, %v897_v5  ;;  %v265_v14 = vmul.f32 %v903_v8, %v903_v8  ;;  %v270_v18 = vmul.f32 %v899_v6, %v899_v6  ;;  %v277_v23 = vadd.f32 %v268_v21, %v267_v20  ;;  %v336_v63 = vld [vmem:[%s1035_s1 + $0x8] sm:$0xff]  ;;  %s468_s28 = sshll.u32 %s242_s26, 4  ;;  %s672_s8 = sshll.u32 %s740_s16, 4  ;;  %s983_s28 = int_to_ptr.vmem [resolvable:$true] %s468_s28  ;;  %s673_s8 = int_to_ptr.vmem [resolvable:$false] %s672_s8 }
  0x3c   : > { %252 = vadd.xlane.f32.xlu0 %v251_v7  ;;  %v254_v13 = vadd.f32 %v905_v9, %v903_v8  ;;  %v266_v15 = vmul.f32 %v905_v9, %v905_v9  ;;  %v271_v16 = vadd.f32 %v264_v12, %v263_v11  ;;  %v338_v21 = vld [vmem:[%s1035_s1 + $0x18] sm:$0xff]  ;;  %s668_s15 = scalar_lea.vmem %s983_s28, 1024  ;;  %s674_s7 = scalar_lea.vmem %s673_s8, 2048 }
  0x3d   : > { %v280_v22 = vadd.f32 %v270_v18, %v269_v17  ;;  %p669_p6 = scmp.ne.s32.totalorder %s983_s28, %s668_s15  ;;  %p675_p8 = scmp.lt.s32.totalorder %s983_s28, %s673_s8 }
  0x3e   : > { %v274_v19 = vadd.f32 %v266_v15, %v265_v14  ;;  %p676_p10 = scmp.lt.s32.totalorder %s674_s7, %s668_s15 }
  0x3f   : > { %261 = vadd.xlane.f32.xlu1 %v260_v10  ;;  %p670_p12 = pnand %p669_p6, %p1046_p11 }
  0x40   : > { %255 = vadd.xlane.f32.xlu0 %v254_v13  ;;  %p677_p0 = por %p676_p10, %p675_p8 }
  0x41   : > { %p671_p13 = pneg %p670_p12 }
  0x43   : > { %272 = vadd.xlane.f32.xlu1 %v271_v16  ;;  %p678_p2 = pnand %p677_p0, %p671_p13 }
  0x44   : > { %275 = vadd.xlane.f32.xlu0 %v274_v19 }
  0x47   : > { %281 = vadd.xlane.f32.xlu1 %v280_v22 }
  0x48   : > { %278 = vadd.xlane.f32.xlu0 %v277_v23  ;;  %v337_v23 = vld [vmem:[%s1035_s1 + $0x10] sm:$0xff] }
  0xc8   : > { %v259_v24 = vpop.xlane.xlu1 %258 }
  0xc9   : > { %v253_v25 = vpop.xlane.xlu0 %252  ;;  %v285_v36 = vmul.f32 0.00390625, %v259_v24 }
  0xca   : > { %v283_v27 = vmul.f32 0.00390625, %v253_v25 }
  0xcb   : > { %v293_v46 = vmul.f32 %v285_v36, %v285_v36 }
  0xcc   : > { %v262_v26 = vpop.xlane.xlu1 %261  ;;  %v291_v31 = vmul.f32 %v283_v27, %v283_v27 }
  0xcd   : > { %v256_v28 = vpop.xlane.xlu0 %255  ;;  %v286_v37 = vmul.f32 0.00390625, %v262_v26 }
  0xce   : > { %v284_v29 = vmul.f32 0.00390625, %v256_v28 }
  0xcf   : > { %v294_v47 = vmul.f32 %v286_v37, %v286_v37 }
  0xd0   : > { %v273_v30 = vpop.xlane.xlu1 %272  ;;  %v292_v34 = vmul.f32 %v284_v29, %v284_v29 }
  0xd1   : > { %v287_v32 = vmul.f32 0.00390625, %v273_v30  ;;  %v276_v33 = vpop.xlane.xlu0 %275 }
  0xd2   : > { %v288_v35 = vmul.f32 0.00390625, %v276_v33 }
  0xd3   : > { %v295_v38 = vsub.f32 %v287_v32, %v291_v31 }
  0xd4   : > { %v296_v39 = vsub.f32 %v288_v35, %v292_v34  ;;  %v282_v40 = vpop.xlane.xlu1 %281 }
  0xd5   : > { %v299_v41 = vmax.f32 %v295_v38, 0.0  ;;  %v290_v42 = vmul.f32 0.00390625, %v282_v40  ;;  %v279_v43 = vpop.xlane.xlu0 %278 }
  0xd6   : > { %v300_v44 = vmax.f32 %v296_v39, 0.0  ;;  %v289_v45 = vmul.f32 0.00390625, %v279_v43  ;;  %v366_v39 = vlaneseq }
  0xd7   : > { %614 = vrsqrt.f32 %v299_v41  ;;  %v298_v48 = vsub.f32 %v290_v42, %v294_v47  ;;  %vm305_vm0 = vcmp.eq.f32.partialorder %v299_v41, inf  ;;  %v308_v55 = vand.u32 2147483648, %v299_v41 }
  0xd8   : > { %616 = vrsqrt.f32 %v300_v44  ;;  %v297_v49 = vsub.f32 %v289_v45, %v293_v46  ;;  %vm307_vm1 = vcmp.eq.f32.partialorder %v299_v41, 0.0  ;;  %vm312_vm2 = vcmp.eq.f32.partialorder %v300_v44, inf }
  0xd9   : > { %v302_v50 = vmax.f32 %v298_v48, 0.0  ;;  %v315_v58 = vand.u32 2147483648, %v300_v44  ;;  %vm314_vm3 = vcmp.eq.f32.partialorder %v300_v44, 0.0  ;;  %v367_v42 = vshrl.u32 %v366_v39, 7  ;;  %v363_v48 = vld [vmem:[%s1037_s3 + $0x8] sm:$0xff] }
  0xda   : > { %v301_v51 = vmax.f32 %v297_v49, 0.0  ;;  %v362_v49 = vld [vmem:[%s1037_s3] sm:$0xff] }
  0xdb   : > { %618 = vrsqrt.f32 %v302_v50  ;;  %vm326_vm4 = vcmp.eq.f32.partialorder %v302_v50, inf  ;;  %v329_v15 = vand.u32 2147483648, %v302_v50  ;;  %vm328_vm6 = vcmp.eq.f32.partialorder %v302_v50, 0.0 }
  0xdc   : > { %620 = vrsqrt.f32 %v301_v51  ;;  %vm319_vm7 = vcmp.eq.f32.partialorder %v301_v51, inf  ;;  %v322_v18 = vand.u32 2147483648, %v301_v51  ;;  %vm321_vm8 = vcmp.eq.f32.partialorder %v301_v51, 0.0 }
  0xdd   : > { %v368_v45 = vsub.s32 0, %v367_v42 }
  0xe1   : > { %v615_v52 = vpop.eup %614 }
  0xe2   : > { %v617_v53 = vpop.eup %616  ;;  %v304_v54 = vmul.f32 %v615_v52, %v299_v41  ;;  %v364_v52 = vld [vmem:[%s1037_s3 + $0x10] sm:$0xff] }
  0xe3   : > { %v311_v56 = vmul.f32 %v617_v53, %v300_v44 }
  0xe4   : > { %v306_v57 = vsel %vm305_vm0, %v299_v41, %v304_v54 }
  0xe5   : > { %v309_v59 = vsel %vm307_vm1, %v308_v55, %v306_v57  ;;  %v313_v60 = vsel %vm312_vm2, %v300_v44, %v311_v56  ;;  %v619_v7 = vpop.eup %618 }
  0xe6   : > { %v331_v62 = vadd.f32 %v309_v59, %v283_v27  ;;  %v316_v3 = vsel %vm314_vm3, %v315_v58, %v313_v60  ;;  %v621_v11 = vpop.eup %620  ;;  %v325_v12 = vmul.f32 %v619_v7, %v302_v50 }
  0xe7   : > { %v332_v10 = vadd.f32 %v316_v3, %v284_v29  ;;  %v318_v16 = vmul.f32 %v621_v11, %v301_v51 }
  0xe8   : > { %v339_v13 = vmul.f32 %v335_v61, %v331_v62  ;;  %v327_v17 = vsel %vm326_vm4, %v302_v50, %v325_v12  ;;  %v739_v61 = vmov 0   ;;  %v387_v62 = vld [vmem:[%s1038_s4 + $0x8] sm:$0xff]  ;;  %v389_v12 = vld [vmem:[%s1038_s4 + $0x18] sm:$0xff] }
  0xe9   : > { %v340_v14 = vmul.f32 %v336_v63, %v332_v10  ;;  %v330_v19 = vsel %vm328_vm6, %v329_v15, %v327_v17  ;;  %v320_v20 = vsel %vm319_vm7, %v301_v51, %v318_v16  ;;  %v365_v51 = vld [vmem:[%s1037_s3 + $0x18] sm:$0xff]  ;;  %613 = vset.pattern.permute.xlu1 %v739_v61  ;;  %612 = vset.pattern.permute.xlu0 %v739_v61  ;;  %v386_v63 = vld [vmem:[%s1038_s4] sm:$0xff] }
  0xea   : > { %v334_v22 = vadd.f32 %v330_v19, %v286_v37  ;;  %v323_v24 = vsel %vm321_vm8, %v322_v18, %v320_v20  ;;  %v344_v26 = vsel %vm343_vm5, %v339_v13, 0.0  ;;  %v388_v13 = vld [vmem:[%s1038_s4 + $0x10] sm:$0xff] }
  0xeb   : > { %v333_v25 = vadd.f32 %v323_v24, %v285_v36  ;;  %v345_v27 = vsel %vm343_vm5, %v340_v14, 0.0  ;;  %v357_v36 = vld [vmem:[%s1036_s2] sm:$0x1] }
  0xec   : > { %v342_v28 = vmul.f32 %v338_v21, %v334_v22  ;;  %v346_v30 = vadd.f32 %v345_v27, %v344_v26 }
  0xed   : > { %v341_v29 = vmul.f32 %v337_v23, %v333_v25 }
  0xee   : > { %v349_v33 = vsel %vm343_vm5, %v342_v28, 0.0 }
  0xef   : > { %v347_v31 = vsel %vm343_vm5, %v341_v29, 0.0 }
  0xf0   : > { %v348_v32 = vadd.f32 %v347_v31, %v346_v30 }
  0xf2   : > { %v350_v34 = vadd.f32 %v349_v33, %v348_v32 }
  0xf4   : > { %v351_v35 = vrot.slane %v350_v34, 4 }
  0xf6   : > { %v352_v37 = vadd.f32 %v351_v35, %v350_v34 }
  0xf8   : > { %v353_v38 = vrot.slane %v352_v37, 2 }
  0xfa   : > { %v354_v40 = vadd.f32 %v353_v38, %v352_v37 }
  0xfc   : > { %v355_v41 = vrot.slane %v354_v40, 1 }
  0xfe   : > { %v356_v43 = vadd.f32 %v355_v41, %v354_v40 }
 0x100   : > { %v358_v44 = vadd.f32 %v357_v36, %v356_v43 }
 0x102   : > { %vm359_vm9 = vcmp.ge.f32.partialorder %v358_v44, 0.0  ;;  %v360_v46 = vmul.f32 0.05, %v358_v44 }
 0x104   : > { %v361_v47 = vsel %vm359_vm9, %v358_v44, %v360_v46 }
 0x105   : > { %v369_v50 = vrot.slane %v361_v47, %v368_v45 }
 0x107   : > { %v371_v53 = vmul.f32 %v369_v50, %v363_v48  ;;  %v370_v54 = vmul.f32 %v369_v50, %v362_v49  ;;  %v373_v57 = vmul.f32 %v369_v50, %v365_v51  ;;  %v372_v58 = vmul.f32 %v369_v50, %v364_v52 }
 0x109   : > { %v377_v55 = vsel %vm343_vm5, %v371_v53, 0.0  ;;  %v374_v56 = vsel %vm343_vm5, %v370_v54, 0.0  ;;  %v383_v59 = vsel %vm343_vm5, %v373_v57, 0.0  ;;  %v380_v60 = vsel %vm343_vm5, %v372_v58, 0.0 }
 0x10a   : > { %378 = vadd.xlane.f32.xlu1 %v377_v55  ;;  %375 = vadd.xlane.f32.xlu0 %v374_v56 }
 0x10e   : > { %384 = vadd.xlane.f32.xlu1 %v383_v59  ;;  %381 = vadd.xlane.f32.xlu0 %v380_v60 }
 0x197   : > { %v379_v3 = vpop.xlane.xlu1 %378  ;;  %v376_v7 = vpop.xlane.xlu0 %375 }
 0x198   : > { %v391_v10 = vadd.f32 %v387_v62, %v379_v3  ;;  %v390_v11 = vadd.f32 %v386_v63, %v376_v7 }
 0x19a   : > { %v551_v14 = vmul.f32 -1.442695, %v391_v10  ;;  %v550_v15 = vmul.f32 -1.442695, %v390_v11 }
 0x19b   : > { %v385_v16 = vpop.xlane.xlu1 %384  ;;  %v382_v17 = vpop.xlane.xlu0 %381 }
 0x19c   : > { %622 = vpow2.f32 %v551_v14  ;;  %v393_v18 = vadd.f32 %v389_v12, %v385_v16  ;;  %v392_v19 = vadd.f32 %v388_v13, %v382_v17 }
 0x19d   : > { %624 = vpow2.f32 %v550_v15 }
 0x19e   : > { %v553_v20 = vmul.f32 -1.442695, %v393_v18  ;;  %v552_v21 = vmul.f32 -1.442695, %v392_v19 }
 0x1a0   : > { %626 = vpow2.f32 %v553_v20 }
 0x1a1   : > { %628 = vpow2.f32 %v552_v21 }
 0x1a6   : > { %v623_v22 = vpop.eup %622 }
 0x1a7   : > { %v625_v23 = vpop.eup %624  ;;  %v407_v24 = vadd.f32 1.0, %v623_v22 }
 0x1a8   : > { %v406_v25 = vadd.f32 1.0, %v625_v23 }
 0x1a9   : > { %630 = vrcp.f32 %v407_v24 }
 0x1aa   : > { %v627_v26 = vpop.eup %626  ;;  %632 = vrcp.f32 %v406_v25 }
 0x1ab   : > { %v629_v27 = vpop.eup %628  ;;  %v409_v29 = vadd.f32 1.0, %v627_v26 }
 0x1ac   : > { %v408_v28 = vadd.f32 1.0, %v629_v27 }
 0x1ae   : > { %634 = vrcp.f32 %v408_v28 }
 0x1af   : > { %636 = vrcp.f32 %v409_v29 }
 0x1b3   : > { %v631_v30 = vpop.eup %630 }
 0x1b4   : > { %v633_v31 = vpop.eup %632  ;;  %425 = vperm.xlu1 %613, %v631_v30  }
 0x1b5   : > { %420 = vperm.xlu0 %612, %v633_v31  }
 0x1b8   : > { %v635_v32 = vpop.eup %634 }
 0x1b9   : > { %430 = vperm.xlu1 %613, %v635_v32   ;;  %v637_v33 = vpop.eup %636 }
 0x1bd   : > { %435 = vperm.xlu1 %613, %v637_v33  }
 0x233   : > { %v426_v34 = vpop.permute.xlu1 %425 }
 0x234   : > { %v440_v35 = vmul.f32 %v426_v34, %v903_v8  ;;  %v441_v37 = vmul.f32 %v426_v34, %v905_v9  ;;  %v421_v38 = vpop.permute.xlu0 %420 }
 0x235   : > { %v438_v39 = vmul.f32 %v421_v38, %v891_v2  ;;  %v439_v40 = vmul.f32 %v421_v38, %v895_v4 }
 0x236   : > { %448 = vst [vmem:[%s242_s26 + $0x10] sm:$0xff] %v440_v35  ;;  %449 = vst [vmem:[%s242_s26 + $0x18] sm:$0xff] %v441_v37 }
 0x237   : > { %446 = vst [vmem:[%s242_s26] sm:$0xff] %v438_v39  ;;  %447 = vst [vmem:[%s242_s26 + $0x8] sm:$0xff] %v439_v40 }
 0x238   : > { %v431_v41 = vpop.permute.xlu1 %430 }
 0x239   : > { %v442_v36 = vmul.f32 %v431_v41, %v887_v0  ;;  %v443_v8 = vmul.f32 %v431_v41, %v889_v1 }
 0x23b   : > { %450 = vst [vmem:[%s242_s26 + $0x20] sm:$0xff] %v442_v36  ;;  %451 = vst [vmem:[%s242_s26 + $0x28] sm:$0xff] %v443_v8 }
 0x23c   : > { %v436_v2 = vpop.permute.xlu1 %435 }
 0x23d   : > { %v444_v4 = vmul.f32 %v436_v2, %v897_v5  ;;  %v445_v0 = vmul.f32 %v436_v2, %v899_v6 }
 0x23f   : > { %452 = vst [vmem:[%s242_s26 + $0x30] sm:$0xff] %v444_v4  ;;  %453 = vst [vmem:[%s242_s26 + $0x38] sm:$0xff] %v445_v0 }
 0x240   : > { %681 = shalt.err (!%p678_p2)
}
 0x241   : > { %s682_s9 = scalar_lea.hbm %s988_s14, 1024  ;;  %s686_s13 = scalar_lea.hbm %s1039_s5, 2048 }
 0x242   : > { %p683_p4 = scmp.ne.s32.totalorder %s988_s14, %s682_s9  ;;  %p687_p9 = scmp.lt.u32.totalorder %s988_s14, %s1039_s5 }
 0x243   : > { %p688_p1 = scmp.lt.u32.totalorder %s686_s13, %s682_s9  ;;  %p690_p6 = scmp.lt.u32.totalorder %s682_s9, %s988_s14 }
 0x244   : > { %p684_p5 = pnand %p683_p4, %p1046_p11 }
 0x245   : > { %p689_p3 = por %p688_p1, %p687_p9 }
 0x246   : > { %p685_p7 = pneg %p684_p5 }
 0x247   : > { %p691_p12 = por %p690_p6, %p689_p3 }
 0x249   : > { %p692_p13 = pnand %p691_p12, %p685_p7 }
 0x24b   : > { %695 = shalt.err (!%p692_p13)
}
 0x24c   : > { %s741_s29 = smov 256   ;;  %s742_s25 = smov 16  }
 0x24d   : > { %563 = dma.vmem_to_hbm [thread:$0]  (%p1046_p11), %s983_s28, 1024, %s988_s14, %s455_s22, %s741_s29, %s741_s29, %s742_s25  }
 0x24e PF: > { %s483_s12 = sand.u32 1, %s722_s18   ;;  %p1047_p8 = scmp.ne.s32.totalorder %s1044_s6, 0 }
 0x24f   : > { %p1048_p10 = scmp.ge.s32.totalorder %s734_s21, 2  ;;  %s484_s15 = scalar_lea.sflag [#allocation4], %s483_s12 }
 0x251   : > { %p570_p0 = pnand %p1048_p10, %p1047_p8 }
 0x253   : > { %717 = dma.done.wait (!%p570_p0), %s484_s15, 1024  }
 0x254   : > { %719 = vsyncadd (!%p570_p0), %s484_s15, 4294966272  ;;  %p18_p2 = scmp.ge.s32.totalorder %s798_s24, 4   ;;  %s1049_s18 = smov %s726_s19 }
 0x255   : > { %s1050_s19 = smov %s730_s20  ;;  %s1051_s20 = smov %s810_s27 }
 0x256   : > { %s1052_s21 = smov %s798_s24  ;;  %20 = sbr.rel (!%p18_p2) target bundleno = 5 (0x5), region = 85 }
 0x25d   :  { %489 = vsyncpa [#allocation3], 1 }
 0x25e   :  { %491 = vsyncpa [#allocation3 + $0x1], 1 }
 0x25f   :  { %492 = vsyncpa [#allocation4], 1 }
 0x260   :  { %494 = vsyncpa [#allocation4 + $0x1], 1 }

</bundles_post_ra>
